<compile_context>
chip_gen: v5e
topology: v5e:2x2
jax: 0.10.0
libtpu: 0.0.40
codegen_flags: <defaults>
</compile_context>

<pallas_src>
import jax
import jax.numpy as jnp
from jax import lax
from jax.experimental import pallas as pl
from jax.experimental.pallas import tpu as pltpu


def _bce_sum_ref(r, t):
    """Clamped-BCE elementwise sum (torch.nn.BCELoss numerator), plain jnp."""
    r = r.astype(jnp.float32)
    t = t.astype(jnp.float32)
    log_r = jnp.maximum(jnp.log(r), -100.0)
    log_1mr = jnp.maximum(jnp.log1p(-r), -100.0)
    return jnp.sum(t * (log_1mr - log_r) - log_1mr)


def _detect_v7x():
    try:
        kind = jax.devices()[0].device_kind.lower()
    except Exception:
        return False
    return "v7" in kind


def _make_kernel(*, rows, lanes, tile_rows, tiles_per_split, num_tiles,
                 acc_rows, needs_mask):

    def kernel(recon_ref, target_ref, out_ref, acc_ref):
        c = pl.program_id(0)          # core-split axis ("parallel")
        t = pl.program_id(1)          # reduction axis ("arbitrary")
        nt = pl.num_programs(1)

        @pl.when(t == 0)
        def _init():
            acc_ref[...] = jnp.zeros_like(acc_ref)

        # Stream native dtype; cast to f32 in-register.
        r = recon_ref[...].astype(jnp.float32)
        tg = target_ref[...].astype(jnp.float32)
        # torch.nn.BCELoss clamps each log term at -100.  Clamp BEFORE any
        # multiply so garbage in masked positions cannot produce 0 * -inf.
        log_r = jnp.maximum(jnp.log(r), -100.0)
        log_1mr = jnp.maximum(jnp.log1p(-r), -100.0)
        # Fused: -(t*log r + (1-t)*log(1-r)) == t*(log(1-r) - log r) - log(1-r)
        bce = tg * (log_1mr - log_r) - log_1mr

        def _accumulate(x):
            if acc_rows == 8:
                # Keep the sublane dim: pure vreg-aligned VALU adds and an
                # unmasked (8, lanes) store; all XLU work deferred to finalize.
                acc_ref[...] += jnp.sum(
                    x.reshape(tile_rows // 8, 8, lanes), axis=0)
            else:
                acc_ref[...] += jnp.sum(x, axis=0, keepdims=True)

        if needs_mask:
            # Only the partial edge tile and any clamped out-of-range duplicate
            # tile take the mask; steady-state tiles stay mask-free.
            logical_tile = c * tiles_per_split + t
            edge = num_tiles - 1

            @pl.when(logical_tile < edge)
            def _steady():
                _accumulate(bce)

            @pl.when(logical_tile >= edge)
            def _edge():
                row0 = logical_tile * tile_rows
                row_ids = row0 + lax.broadcasted_iota(
                    jnp.int32, (tile_rows, lanes), 0)
                # jnp.where is a select: NaN/inf in out-of-range rows cannot leak.
                _accumulate(jnp.where(row_ids < rows, bce, 0.0))
        else:
            _accumulate(bce)

        @pl.when(t == nt - 1)
        def _finalize():
            out_ref[0, 0] = jnp.sum(acc_ref[...])

    return kernel


def ae_loss_l1(recon, target, linear_weights, lambda_=0.01,
               target_tile_bytes=None, num_splits=None):
    """Pallas implementation of AELossL1.forward.

    recon, target : same shape; recon in (0,1) (BCELoss requirement).
    linear_weights: list of 2-D (out_features, in_features) weights of the
                    model's nn.Linear layers (analogue of iterating
                    model.modules() for nn.Linear).
    """
    assert recon.shape == target.shape
    for w in linear_weights:
        assert w.ndim == 2

    n_true = recon.size
    is_v7 = _detect_v7x()

    if target_tile_bytes is None:
        # Per-input tile budget: amortize the ~0.35 us/step overhead while
        # staying inside 2 inputs x 2 buffers x tile on each chip's VMEM.
        target_tile_bytes = (4 << 20) if is_v7 else (8 << 20)
    vmem_limit = (40 << 20) if is_v7 else (64 << 20)

    # L1 regularizer over the Linear weights: one-shot tiny reduction -> plain
    # XLA; runs concurrently with the pallas_call, weights never enter VMEM.
    l1 = jnp.float32(0.0)
    for w in linear_weights:
        l1 = l1 + jnp.sum(jnp.abs(w.astype(jnp.float32)))

    flat_r = recon.reshape(-1)
    flat_t = target.reshape(-1)

    # Widest lane-dense slab that is a pure (free) reshape of the flat data.
    lanes = None
    for cand in (2048, 1024, 512, 256, 128):
        if n_true % cand == 0:
            lanes = cand
            break

    tail_sum = jnp.float32(0.0)
    if lanes is None:
        # Rare: element count not a multiple of 128.  Stream the 128-aligned
        # bulk through the kernel, reduce the small tail with plain jnp.
        lanes = 512 if n_true >= 512 else 128
        bulk = (n_true // lanes) * lanes
        tail_sum = _bce_sum_ref(flat_r[bulk:], flat_t[bulk:])
        # TODO(synk): this slice still materializes one HBM copy of the bulk;
        # unavoidable without a ragged 1-D kernel path.
        flat_r = flat_r[:bulk]
        flat_t = flat_t[:bulk]

    rows = flat_r.size // lanes

    if rows == 0:
        bce_sum = tail_sum
    else:
        r2 = flat_r.reshape(rows, lanes)
        t2 = flat_t.reshape(rows, lanes)

        itemsize = max(jnp.dtype(r2.dtype).itemsize,
                       jnp.dtype(t2.dtype).itemsize)
        tile_rows = max(16, target_tile_bytes // (itemsize * lanes))
        tile_rows = (tile_rows // 16) * 16      # bf16-friendly sublane packing
        if tile_rows >= rows:
            tile_rows = rows                    # full dim is always legal
        num_tiles = pl.cdiv(rows, tile_rows)

        if num_splits is None:
            # 2-way split only where there is a second TensorCore to feed.
            num_splits = 2 if (is_v7 and num_tiles >= 2) else 1
        num_splits = max(1, min(int(num_splits), num_tiles))
        tiles_per_split = pl.cdiv(num_tiles, num_splits)

        needs_mask = (num_tiles * tile_rows != rows) or \
                     (tiles_per_split * num_splits != num_tiles)
        acc_rows = 8 if tile_rows % 8 == 0 else 1

        kernel = _make_kernel(
            rows=rows, lanes=lanes, tile_rows=tile_rows,
            tiles_per_split=tiles_per_split, num_tiles=num_tiles,
            acc_rows=acc_rows, needs_mask=needs_mask)

        def data_map(c, t):
            # Clamp fully out-of-range logical tiles (their rows are masked).
            return (jnp.minimum(c * tiles_per_split + t, num_tiles - 1), 0)

        out = pl.pallas_call(
            kernel,
            out_shape=jax.ShapeDtypeStruct((num_splits, 1), jnp.float32),
            grid=(num_splits, tiles_per_split),
            in_specs=[pl.BlockSpec((tile_rows, lanes), data_map),
                      pl.BlockSpec((tile_rows, lanes), data_map)],
            out_specs=pl.BlockSpec((1, 1), lambda c, t: (c, 0),
                                   memory_space=pltpu.SMEM),
            scratch_shapes=[pltpu.VMEM((acc_rows, lanes), jnp.float32)],
            compiler_params=pltpu.CompilerParams(
                dimension_semantics=("parallel", "arbitrary"),
                vmem_limit_bytes=vmem_limit),
        )(r2, t2)

        bce_sum = jnp.sum(out) + tail_sum

    return bce_sum * (1.0 / float(n_true)) + lambda_ * l1


def _reference_loss(recon, target, linear_weights, lambda_=0.01):
    r = recon.astype(jnp.float32)
    t = target.astype(jnp.float32)
    log_r = jnp.maximum(jnp.log(r), -100.0)
    log_1mr = jnp.maximum(jnp.log1p(-r), -100.0)
    bce = jnp.mean(-(t * log_r + (1.0 - t) * log_1mr))
    l1 = sum(jnp.sum(jnp.abs(w.astype(jnp.float32))) for w in linear_weights)
    return bce + lambda_ * l1


if __name__ == "__main__":
    key = jax.random.PRNGKey(0)
    keys = jax.random.split(key, 10)

    # Synthetic autoencoder Linear weights (torch layout (out, in)).
    w1 = 0.1 * jax.random.normal(keys[0], (32, 64), dtype=jnp.float32)
    w2 = 0.1 * jax.random.normal(keys[1], (64, 32), dtype=jnp.float32)
    weights = [w1, w2]

    def check(recon, target, **kw):
        loss = jax.block_until_ready(
            ae_loss_l1(recon, target, weights, lambda_=0.01, **kw))
        ref = _reference_loss(recon, target, weights, lambda_=0.01)
        assert jnp.allclose(loss, ref, rtol=1e-5, atol=1e-4), (loss, ref, kw)

    # 1) Small single-tile case: NCHW batch=2, channels=4, spatial=16x16.
    recon1 = jax.nn.sigmoid(jax.random.normal(keys[2], (2, 4, 16, 16), jnp.float32))
    target1 = jax.random.uniform(keys[3], (2, 4, 16, 16), dtype=jnp.float32)
    check(recon1, target1)

    # 2) Forced-small tiles: multi-tile grid, partial edge tile + masking.
    recon2 = jax.nn.sigmoid(jax.random.normal(keys[4], (2, 8, 48, 48), jnp.float32))
    target2 = jax.random.uniform(keys[5], (2, 8, 48, 48), dtype=jnp.float32)
    check(recon2, target2, target_tile_bytes=32 * 1024)

    # 3) bf16 inputs (native-dtype streaming) + forced 2-way core split with an
    #    odd tile count -> exercises the clamped out-of-range duplicate tile.
    recon3 = jax.nn.sigmoid(
        jax.random.normal(keys[6], (4, 8, 48, 48), jnp.float32)).astype(jnp.bfloat16)
    target3 = jax.random.uniform(keys[7], (4, 8, 48, 48),
                                 dtype=jnp.float32).astype(jnp.bfloat16)
    check(recon3, target3, target_tile_bytes=64 * 1024, num_splits=2)

    # 4) Element count not a multiple of 128 -> bulk-through-kernel + jnp tail.
    recon4 = jax.nn.sigmoid(jax.random.normal(keys[8], (3, 5, 7, 11), jnp.float32))
    target4 = jax.random.uniform(keys[9], (3, 5, 7, 11), dtype=jnp.float32)
    check(recon4, target4)

    print("KERNEL_OK")
</pallas_src>

<mosaic_0001>
module attributes {stable_mosaic.version = 11 : i64} {
  func.func @kernel(%arg0: i32, %arg1: i32, %arg2: memref<1x2048xf32, #tpu.memory_space<vmem>>, %arg3: memref<1x2048xf32, #tpu.memory_space<vmem>>, %arg4: memref<1x1xf32, #tpu.memory_space<smem>>, %arg5: memref<1x2048xf32, #tpu.memory_space<vmem>>) attributes {dimension_semantics = [#tpu.dimension_semantics<parallel>, #tpu.dimension_semantics<arbitrary>], iteration_bounds = array<i64: 1, 1>, scalar_prefetch = 0 : i64, scratch_operands = 1 : i64, tpu.core_type = #tpu.core_type<tc>, window_params = [{transform_indices = @transform_0, window_bounds = array<i64: 1, 2048>}, {transform_indices = @transform_1, window_bounds = array<i64: 1, 2048>}, {transform_indices = @transform_2, window_bounds = array<i64: 1, 1>}]} {
    %c0_i32 = arith.constant 0 : i32
    %0 = arith.cmpi eq, %arg1, %c0_i32 : i32
    %1 = arith.extui %0 : i1 to i32
    %c0_i32_0 = arith.constant 0 : i32
    %2 = arith.cmpi ne, %1, %c0_i32_0 : i32
    scf.if %2 {
      %cst_13 = arith.constant 0.000000e+00 : f32
      %24 = vector.broadcast %cst_13 : f32 to vector<1x2048xf32>
      %c0_14 = arith.constant 0 : index
      %c0_15 = arith.constant 0 : index
      %25 = vector.load %arg5[%c0_14, %c0_15] : memref<1x2048xf32, #tpu.memory_space<vmem>>, vector<1x2048xf32>
      tpu.vector_store %arg5[%c0_14, %c0_15], %24 {strides = array<i32>} : memref<1x2048xf32, #tpu.memory_space<vmem>>, vector<1x2048xf32>,
    } else {
    }
    %c0 = arith.constant 0 : index
    %c0_1 = arith.constant 0 : index
    %3 = vector.load %arg2[%c0, %c0_1] : memref<1x2048xf32, #tpu.memory_space<vmem>>, vector<1x2048xf32>
    %c0_2 = arith.constant 0 : index
    %c0_3 = arith.constant 0 : index
    %4 = vector.load %arg3[%c0_2, %c0_3] : memref<1x2048xf32, #tpu.memory_space<vmem>>, vector<1x2048xf32>
    %5 = math.log %3 : vector<1x2048xf32>
    %cst = arith.constant -1.000000e+02 : f32
    %6 = vector.broadcast %cst : f32 to vector<1x2048xf32>
    %7 = arith.maximumf %5, %6 : vector<1x2048xf32>
    %cst_4 = arith.constant 0.000000e+00 : f32
    %8 = vector.broadcast %cst_4 : f32 to vector<1x2048xf32>
    %9 = arith.subf %8, %3 : vector<1x2048xf32>
    %10 = math.log1p %9 : vector<1x2048xf32>
    %cst_5 = arith.constant -1.000000e+02 : f32
    %11 = vector.broadcast %cst_5 : f32 to vector<1x2048xf32>
    %12 = arith.maximumf %10, %11 : vector<1x2048xf32>
    %13 = arith.subf %12, %7 : vector<1x2048xf32>
    %14 = arith.mulf %4, %13 : vector<1x2048xf32>
    %15 = arith.subf %14, %12 : vector<1x2048xf32>
    %c0_6 = arith.constant 0 : index
    %c0_7 = arith.constant 0 : index
    %16 = vector.load %arg5[%c0_6, %c0_7] : memref<1x2048xf32, #tpu.memory_space<vmem>>, vector<1x2048xf32>
    %cst_8 = arith.constant dense<0.000000e+00> : vector<2048xf32>
    %17 = vector.multi_reduction <add>, %15, %cst_8 [0] : vector<1x2048xf32> to vector<2048xf32>
    %18 = vector.shape_cast %17 : vector<2048xf32> to vector<1x2048xf32>
    %19 = arith.addf %16, %18 : vector<1x2048xf32>
    %c0_9 = arith.constant 0 : index
    %c0_10 = arith.constant 0 : index
    %20 = vector.load %arg5[%c0_9, %c0_10] : memref<1x2048xf32, #tpu.memory_space<vmem>>, vector<1x2048xf32>
    tpu.vector_store %arg5[%c0_9, %c0_10], %19 {strides = array<i32>} : memref<1x2048xf32, #tpu.memory_space<vmem>>, vector<1x2048xf32>,
    %c0_i32_11 = arith.constant 0 : i32
    %21 = arith.cmpi eq, %arg1, %c0_i32_11 : i32
    %22 = arith.extui %21 : i1 to i32
    %c0_i32_12 = arith.constant 0 : i32
    %23 = arith.cmpi ne, %22, %c0_i32_12 : i32
    scf.if %23 {
      %c0_13 = arith.constant 0 : index
      %c0_14 = arith.constant 0 : index
      %24 = vector.load %arg5[%c0_13, %c0_14] : memref<1x2048xf32, #tpu.memory_space<vmem>>, vector<1x2048xf32>
      %25 = vector.shape_cast %24 : vector<1x2048xf32> to vector<1x1x2048xf32>
      %cst_15 = arith.constant dense<0.000000e+00> : vector<1xf32>
      %26 = vector.multi_reduction <add>, %25, %cst_15 [1, 2] : vector<1x1x2048xf32> to vector<1xf32>
      %27 = vector.shape_cast %26 : vector<1xf32> to vector<1x1x1xf32>
      %28 = vector.extract %27[0, 0, 0] : f32 from vector<1x1x1xf32>
      %c0_16 = arith.constant 0 : index
      %c0_17 = arith.constant 0 : index
      %29 = memref.load %arg4[%c0_16, %c0_17] : memref<1x1xf32, #tpu.memory_space<smem>>
      memref.store %28, %arg4[%c0_16, %c0_17] : memref<1x1xf32, #tpu.memory_space<smem>>
    } else {
    }
    return
  }
  func.func @transform_0(%arg0: i32, %arg1: i32) -> (i32, i32) {
    %c1_i32 = arith.constant 1 : i32
    %0 = arith.muli %arg0, %c1_i32 : i32
    %1 = arith.addi %0, %arg1 : i32
    %c0_i32 = arith.constant 0 : i32
    %2 = arith.minsi %1, %c0_i32 : i32
    %c0_i32_0 = arith.constant 0 : i32
    %c0_i32_1 = arith.constant 0 : i32
    return %2, %c0_i32_0 : i32, i32
  }
  func.func @transform_1(%arg0: i32, %arg1: i32) -> (i32, i32) {
    %c1_i32 = arith.constant 1 : i32
    %0 = arith.muli %arg0, %c1_i32 : i32
    %1 = arith.addi %0, %arg1 : i32
    %c0_i32 = arith.constant 0 : i32
    %2 = arith.minsi %1, %c0_i32 : i32
    %c0_i32_0 = arith.constant 0 : i32
    %c0_i32_1 = arith.constant 0 : i32
    return %2, %c0_i32_0 : i32, i32
  }
  func.func @transform_2(%arg0: i32, %arg1: i32) -> (i32, i32) {
    %c0_i32 = arith.constant 0 : i32
    %c0_i32_0 = arith.constant 0 : i32
    return %arg0, %c0_i32 : i32, i32
  }
}

</mosaic_0001>

<bundles_post_ra>
// kernel: tpu_custom_call.1
= control target key start
LH: loop header
LB: loop body
LE: loop exit
PB: predicated region body
PF: predicated region fallthrough
CT: control target
= control target key end

     0   :  { %7 = vsyncpa [#allocation4], 0  ;;  %s333_s0 = inlined_call_operand.hbm [shape: f32[1,2048], index: 0, kind: input, shape index: {}]   ;;  %s334_s1 = inlined_call_operand.hbm [shape: f32[1,2048], index: 1, kind: input, shape index: {}]   ;;  %s335_s2 = inlined_call_operand.hbm [shape: f32[1,1], index: 2, kind: output, shape index: {}]  }
   0x1   :  { %8 = vsyncpa [#allocation7], 0 }
   0x2   :  { %9 = vsyncpa [#allocation5], 0  ;;  %s20_s11 = sshll.u32 %s333_s0, 4  ;;  %s290_s12 = smov [#allocation3]   ;;  %s21_s11 = int_to_ptr.hbm [resolvable:$true] %s20_s11 }
   0x3   :  { %s22_s13 = sshll.u32 %s290_s12, 4  ;;  %s36_s16 = sshll.u32 %s334_s1, 4  ;;  %s23_s13 = int_to_ptr.vmem [resolvable:$true] %s22_s13  ;;  %s37_s16 = int_to_ptr.hbm [resolvable:$true] %s36_s16 }
   0x4   :  { %25 = dma.hbm_to_vmem [thread:$0]  %s21_s11, 256, %s23_s13, [#allocation4]  }
   0x5   :  { %s291_s17 = smov [#allocation6]  }
   0x6   :  { %s38_s18 = sshll.u32 %s291_s17, 4  ;;  %s39_s18 = int_to_ptr.vmem [resolvable:$true] %s38_s18 }
   0x7   :  { %41 = dma.hbm_to_vmem [thread:$0]  %s37_s16, 256, %s39_s18, [#allocation7]  }
   0x8   :  { %284 = dma.done.wait [#allocation4], 256  }
   0x9   :  { %285 = vsyncadd [#allocation4], 4294967040 }
   0xa   :  { %286 = dma.done.wait [#allocation7], 256  }
   0xb   :  { %287 = vsyncadd [#allocation7], 4294967040  ;;  %v62_v0 = vld [vmem:[#allocation3] sm:$0xff]  ;;  %v63_v1 = vld [vmem:[#allocation3 + $0x8] sm:$0xff]  ;;  %vm147_vm2 = vcmask 1040384   ;;  %s195_s19 = sshll.u32 %s335_s2, 4  ;;  %s196_s19 = int_to_ptr.hbm [resolvable:$true] %s195_s19 }
   0xc   :  { %216 = vlog2.f32 %v62_v0  ;;  %v72_v2 = vsub.f32 0.0, %v62_v0  ;;  %v73_v3 = vsub.f32 0.0, %v63_v1  ;;  %v64_v26 = vld [vmem:[#allocation6] sm:$0xff]  ;;  %v65_v33 = vld [vmem:[#allocation6 + $0x8] sm:$0xff]  ;;  %s292_s21 = smov [#allocation8]  }
   0xd   :  { %218 = vlog2.f32 %v63_v1 }
   0xe   :  { %v74_v4 = vadd.f32 1.0, %v72_v2  ;;  %v77_v5 = vmul.f32 -0.5, %v72_v2  ;;  %v83_v6 = vadd.f32 1.0, %v73_v3  ;;  %v86_v7 = vmul.f32 -0.5, %v73_v3 }
   0xf   :  { %v80_v10 = vand.u32 2147483647, %v72_v2  ;;  %v89_v12 = vand.u32 2147483647, %v73_v3 }
  0x10   :  { %220 = vlog2.f32 %v74_v4  ;;  %v78_v8 = vadd.f32 1.0, %v77_v5  ;;  %v87_v11 = vadd.f32 1.0, %v86_v7 }
  0x11   :  { %222 = vlog2.f32 %v83_v6  ;;  %vm81_vm0 = vcmp.lt.f32.partialorder %v80_v10, 0.0004427343  ;;  %vm90_vm1 = vcmp.lt.f32.partialorder %v89_v12, 0.0004427343 }
  0x12   :  { %v217_v9 = vpop.eup %216  ;;  %v79_v15 = vmul.f32 %v78_v8, %v72_v2  ;;  %v88_v17 = vmul.f32 %v87_v11, %v73_v3 }
  0x13   :  { %v67_v13 = vmul.f32 0.6931472, %v217_v9  ;;  %v219_v14 = vpop.eup %218 }
  0x14   :  { %v69_v22 = vmul.f32 0.6931472, %v219_v14 }
  0x15   :  { %v70_v20 = vmax.f32 %v67_v13, -100.0 }
  0x16   :  { %v221_v16 = vpop.eup %220  ;;  %v71_v28 = vmax.f32 %v69_v22, -100.0 }
  0x17   :  { %v223_v18 = vpop.eup %222  ;;  %v76_v19 = vmul.f32 0.6931472, %v221_v16 }
  0x18   :  { %v85_v21 = vmul.f32 0.6931472, %v223_v18 }
  0x19   :  { %v82_v23 = vsel %vm81_vm0, %v79_v15, %v76_v19 }
  0x1a   :  { %v91_v24 = vsel %vm90_vm1, %v88_v17, %v85_v21  ;;  %v92_v25 = vmax.f32 %v82_v23, -100.0 }
  0x1b   :  { %v93_v29 = vmax.f32 %v91_v24, -100.0 }
  0x1c   :  { %v94_v27 = vsub.f32 %v92_v25, %v70_v20 }
  0x1d   :  { %v95_v32 = vsub.f32 %v93_v29, %v71_v28 }
  0x1e   :  { %v96_v30 = vmul.f32 %v94_v27, %v64_v26 }
  0x1f   :  { %v97_v38 = vmul.f32 %v95_v32, %v65_v33 }
  0x20   :  { %v98_v31 = vsub.f32 %v96_v30, %v92_v25 }
  0x21   :  { %v99_v47 = vsub.f32 %v97_v38, %v93_v29 }
  0x22   :  { %v115_v34 = vperm.slane %v98_v31, 0  ;;  %v116_v35 = vperm.slane %v98_v31, 1  ;;  %v117_v36 = vperm.slane %v98_v31, 2  ;;  %v118_v37 = vperm.slane %v98_v31, 3 }
  0x23   :  { %v119_v39 = vperm.slane %v98_v31, 4  ;;  %v120_v44 = vperm.slane %v98_v31, 5  ;;  %v121_v48 = vperm.slane %v98_v31, 6  ;;  %v122_v51 = vperm.slane %v98_v31, 7 }
  0x24   :  { %v148_v40 = vsel %vm147_vm2, %v115_v34, 0.0  ;;  %v149_v41 = vsel %vm147_vm2, %v116_v35, 0.0  ;;  %v151_v42 = vsel %vm147_vm2, %v117_v36, 0.0  ;;  %v153_v45 = vsel %vm147_vm2, %v118_v37, 0.0 }
  0x25   :  { %v150_v43 = vadd.f32 %v149_v41, %v148_v40  ;;  %v155_v49 = vsel %vm147_vm2, %v119_v39, 0.0  ;;  %v157_v52 = vsel %vm147_vm2, %v120_v44, 0.0  ;;  %v123_v54 = vperm.slane %v99_v47, 0 }
  0x26   :  { %v159_v55 = vsel %vm147_vm2, %v121_v48, 0.0  ;;  %v124_v57 = vperm.slane %v99_v47, 1  ;;  %v161_v58 = vsel %vm147_vm2, %v122_v51, 0.0  ;;  %v125_v60 = vperm.slane %v99_v47, 2 }
  0x27   :  { %v152_v46 = vadd.f32 %v151_v42, %v150_v43  ;;  %v163_v61 = vsel %vm147_vm2, %v123_v54, 0.0  ;;  %v126_v63 = vperm.slane %v99_v47, 3  ;;  %v127_v2 = vperm.slane %v99_v47, 4 }
  0x28   :  { %v165_v0 = vsel %vm147_vm2, %v124_v57, 0.0  ;;  %v167_v3 = vsel %vm147_vm2, %v125_v60, 0.0  ;;  %v128_v5 = vperm.slane %v99_v47, 5  ;;  %v129_v8 = vperm.slane %v99_v47, 6 }
  0x29   :  { %v154_v50 = vadd.f32 %v153_v45, %v152_v46  ;;  %v169_v6 = vsel %vm147_vm2, %v126_v63, 0.0  ;;  %v171_v9 = vsel %vm147_vm2, %v127_v2, 0.0  ;;  %v130_v11 = vperm.slane %v99_v47, 7 }
  0x2a   :  { %v173_v12 = vsel %vm147_vm2, %v128_v5, 0.0  ;;  %v175_v14 = vsel %vm147_vm2, %v129_v8, 0.0 }
  0x2b   :  { %v156_v53 = vadd.f32 %v155_v49, %v154_v50  ;;  %v177_v16 = vsel %vm147_vm2, %v130_v11, 0.0 }
  0x2d   :  { %v158_v56 = vadd.f32 %v157_v52, %v156_v53 }
  0x2f   :  { %v160_v59 = vadd.f32 %v159_v55, %v158_v56 }
  0x31   :  { %v162_v62 = vadd.f32 %v161_v58, %v160_v59 }
  0x33   :  { %v164_v1 = vadd.f32 %v163_v61, %v162_v62 }
  0x35   :  { %v166_v4 = vadd.f32 %v165_v0, %v164_v1 }
  0x37   :  { %v168_v7 = vadd.f32 %v167_v3, %v166_v4 }
  0x39   :  { %v170_v10 = vadd.f32 %v169_v6, %v168_v7 }
  0x3b   :  { %v172_v13 = vadd.f32 %v171_v9, %v170_v10 }
  0x3d   :  { %v174_v15 = vadd.f32 %v173_v12, %v172_v13 }
  0x3f   :  { %v176_v17 = vadd.f32 %v175_v14, %v174_v15 }
  0x41   :  { %v178_v18 = vadd.f32 %v177_v16, %v176_v17 }
  0x43   :  { %179 = vadd.xlane.f32.xlu0 %v178_v18 }
  0xb6   :  { %v180_v19 = vpop.xlane.xlu0 %179 }
  0xb7   :  { %v181_v20 = vrot.slane %v180_v19, 4 }
  0xb9   :  { %v182_v21 = vadd.f32 %v181_v20, %v180_v19 }
  0xbb   :  { %v183_v22 = vrot.slane %v182_v21, 2 }
  0xbd   :  { %v184_v23 = vadd.f32 %v183_v22, %v182_v21 }
  0xbf   :  { %v185_v24 = vrot.slane %v184_v23, 1 }
  0xc1   :  { %v186_v25 = vadd.f32 %v185_v24, %v184_v23 }
  0xc3   :  { %211 = vpush %v186_v25 }
  0xf4   :  { %s212_s20 = spop %211 }
  0xf5   :  { %189 = sst [smem:[#allocation8]] %s212_s20 }
  0xf6   :  { %198 = dma.smem_to_hbm %s292_s21, 16, %s196_s19, [#allocation5]  }
  0xf7   :  { %288 = dma.done.wait [#allocation5], 16  }
  0xf8   :  { %289 = vsyncadd [#allocation5], 4294967280 }
  0xf9   :  { %203 = sfence }
  0xfa   :  { %204 = vsyncpa [#allocation4], 1 }
  0xfb   :  { %205 = vsyncpa [#allocation7], 1 }
  0xfc   :  { %206 = vsyncpa [#allocation5], 1 }

</bundles_post_ra>
